<compile_context>
chip_gen: v7x
topology: tpu7x:2x2x1
jax: 0.10.0
libtpu: 0.0.40
codegen_flags: <defaults>
</compile_context>

<pallas_src>
import functools

import jax
import jax.numpy as jnp
from jax import lax
from jax.experimental import pallas as pl
from jax.experimental.pallas import tpu as pltpu


# --------------------------------------------------------------------------- #
# Kernel
# --------------------------------------------------------------------------- #
def _attention_kernel(x_ref, wqt_ref, bq_ref, wkv_ref, bkv_ref, o_ref, *,
                      scale, dim_k, dim_v, batch_block):
    # Tiny parameters: load once, reuse across the whole batch block.
    wqt = wqt_ref[...]            # (D, dim_q)            == Wq^T
    wkv = wkv_ref[...]            # (dim_k+dim_v+1, D)    == [Wk; Wv; 0]
    seq_len = x_ref.shape[1]
    dim_q = wqt.shape[1]
    dkv = wkv.shape[0]

    # Hoisted bias broadcasts (JAX does not CSE broadcast_in_dim; do it once,
    # not once per unrolled batch iteration).
    bq_b = jnp.broadcast_to(bq_ref[...], (seq_len, dim_q))     # (L, dim_q)
    bkv_b = jnp.broadcast_to(bkv_ref[...], (dkv, seq_len))     # (dkv, L)

    def body(bi, carry):
        xb = x_ref[bi]                                          # (L, D)

        # Q projection in row-major (L, dim_q); softmax scale folded into q
        # (~L/dim_q fewer VPU multiplies than scaling the (L, L) scores).
        q = (jnp.dot(xb, wqt, preferred_element_type=jnp.float32) + bq_b) * scale

        # Fused K/V projection, produced directly in transposed (dkv, L)
        # layout via an rhs-dim contraction (no transpose materialized).
        # Last row of wkv is zeros with bias 1.0, so kv_t[-1] == ones(L).
        kv_t = lax.dot_general(wkv, xb, (((1,), (1,)), ((), ())),
                               preferred_element_type=jnp.float32) + bkv_b
        k_t = kv_t[:dim_k]                                      # (dim_k, L)
        v_aug = kv_t[dim_k:]                                    # (dim_v+1, L), last row == 1

        # scores = Q @ K^T in standard MXU orientation thanks to k_t layout.
        s = jnp.dot(q, k_t, preferred_element_type=jnp.float32)  # (L, L)

        # Numerically-stable, deferred-normalization softmax.
        m = jnp.max(s, axis=-1, keepdims=True)                  # (L, 1)
        e = jnp.exp(s - m)                                      # (L, L), unnormalized

        # out_aug^T = V_aug^T @ E^T  ->  (dim_v+1, L):
        #   rows [:dim_v]  = unnormalized attention output (lane-dense, last dim L)
        #   row  [dim_v]   = softmax denominator per query, already in (1, L) layout.
        out_aug = lax.dot_general(v_aug, e, (((1,), (1,)), ((), ())),
                                  preferred_element_type=jnp.float32)

        inv = pl.reciprocal(out_aug[dim_v:dim_v + 1], approx=True)   # (1, L), EUP
        o_ref[bi] = (out_aug[:dim_v] * inv).astype(o_ref.dtype)      # (dim_v, L)
        return carry

    if batch_block <= 2:
        # Fully static unroll is fine (and cheapest) for 1-2 iterations.
        for bi in range(batch_block):
            body(bi, None)
    else:
        # Visible loop bounds live ranges (avoids spilling several concurrent
        # (L, L) tiles out of the 64-entry vreg file).
        lax.fori_loop(0, batch_block, body, None, unroll=2)


# --------------------------------------------------------------------------- #
# Parameter prep (run ONCE at setup, not per forward call)
# --------------------------------------------------------------------------- #
def prepare_attention_params(wq, bq, wk, bk, wv, bv):
    dim_q, dim_in = wq.shape
    dim_k = wk.shape[0]
    dim_v = wv.shape[0]
    assert dim_q == dim_k, "q/k projection dims must match for QK^T"

    wq_t = jnp.asarray(wq).T                                   # (D, dim_q)
    bq2 = jnp.asarray(bq).reshape(1, dim_q)                    # (1, dim_q)
    # Fused + augmented K/V weights: extra all-zero row with bias 1.0 makes the
    # projected slab carry a constant "ones" row, which turns the PV matmul
    # into [unnormalized out; softmax denom] in one shot.
    w_kv = jnp.concatenate(
        [jnp.asarray(wk), jnp.asarray(wv), jnp.zeros((1, dim_in), wk.dtype)],
        axis=0)                                                # (dim_k+dim_v+1, D)
    b_kv = jnp.concatenate(
        [jnp.asarray(bk), jnp.asarray(bv), jnp.ones((1,), bk.dtype)],
        axis=0).reshape(dim_k + dim_v + 1, 1)                  # (dim_k+dim_v+1, 1)
    return {"wq_t": wq_t, "bq": bq2, "w_kv": w_kv, "b_kv": b_kv,
            "dim_k": dim_k, "dim_v": dim_v}


# --------------------------------------------------------------------------- #
# Grid heuristics
# --------------------------------------------------------------------------- #
def _tensorcores_per_device():
    """Best-effort TC-per-device count; 1 on v5e/v6e, 2 on v7x."""
    try:
        dev = jax.devices()[0]
        for attr in ("num_cores", "num_cores_per_chip", "core_count"):
            val = getattr(dev, attr, None)
            if isinstance(val, int) and val > 0:
                return val
        kind = str(getattr(dev, "device_kind", "")).lower()
        if "v7" in kind or "7x" in kind:
            return 2
    except Exception:
        pass
    return 1


def _default_batch_block(n, seq_len):
    cores = _tensorcores_per_device()
    # VMEM-aware cap: ~3 live (L, L) f32 tiles per batch item; stay well under
    # the 32 MiB scoped default (matters on v7x, 64 MiB physical VMEM).
    per_item = 3 * seq_len * seq_len * 4
    target = max(1, min(n, (24 << 20) // max(per_item, 1)))
    if cores >= 2 and n >= 2:
        # Keep grid length >= #TensorCores so the "parallel" axis shards
        # across cores (v7x); on single-TC parts collapse to one grid step.
        target = min(target, max(1, n // cores))
    # Largest divisor of n that is <= target (BlockSpecs need even tiling).
    return max(d for d in range(1, target + 1) if n % d == 0)


# --------------------------------------------------------------------------- #
# Forward call (single jitted path; params pre-oriented)
# --------------------------------------------------------------------------- #
@functools.partial(jax.jit,
                   static_argnames=("scale", "dim_k", "dim_v", "batch_block"))
def _attention_fwd(x, wq_t, bq2, w_kv, b_kv, *, scale, dim_k, dim_v,
                   batch_block):
    n, seq_len, dim_in = x.shape
    dim_q = wq_t.shape[1]
    dkv = w_kv.shape[0]              # dim_k + dim_v + 1 (augmented ones row)

    kernel = functools.partial(_attention_kernel, scale=scale, dim_k=dim_k,
                               dim_v=dim_v, batch_block=batch_block)

    # Kernel writes a lane-dense (n, dim_v, L) slab (last dim = seq_len, so
    # stores are unmasked); transpose back to (n, L, dim_v) outside where it
    # can fuse with downstream ops.
    out_t = pl.pallas_call(
        kernel,
        out_shape=jax.ShapeDtypeStruct((n, dim_v, seq_len), x.dtype),
        grid_spec=pltpu.PrefetchScalarGridSpec(
            num_scalar_prefetch=0,
            grid=(n // batch_block,),
            in_specs=[
                pl.BlockSpec((batch_block, seq_len, dim_in),
                             lambda b: (b, 0, 0)),
                pl.BlockSpec((dim_in, dim_q), lambda b: (0, 0)),
                pl.BlockSpec((1, dim_q), lambda b: (0, 0)),
                pl.BlockSpec((dkv, dim_in), lambda b: (0, 0)),
                pl.BlockSpec((dkv, 1), lambda b: (0, 0)),
            ],
            out_specs=pl.BlockSpec((batch_block, dim_v, seq_len),
                                   lambda b: (b, 0, 0)),
        ),
        compiler_params=pltpu.CompilerParams(
            dimension_semantics=("parallel",)),
    )(x, wq_t, bq2, w_kv, b_kv)

    return jnp.transpose(out_t, (0, 2, 1))                     # (n, L, dim_v)


def attention_forward(x, params, *, scale, batch_block=None):
    n, seq_len, _ = x.shape
    if batch_block is None:
        batch_block = _default_batch_block(n, seq_len)
    assert n % batch_block == 0, "batch_block must divide the batch size"
    return _attention_fwd(x, params["wq_t"], params["bq"], params["w_kv"],
                          params["b_kv"], scale=float(scale),
                          dim_k=params["dim_k"], dim_v=params["dim_v"],
                          batch_block=batch_block)


# --------------------------------------------------------------------------- #
# Pure-JAX reference (mirrors the PyTorch forward exactly)
# --------------------------------------------------------------------------- #
def attention_ref(x, wq, bq, wk, bk, wv, bv, *, scale):
    q = jnp.einsum("nld,qd->nlq", x, wq) + bq
    k = jnp.einsum("nld,kd->nlk", x, wk) + bk
    v = jnp.einsum("nld,vd->nlv", x, wv) + bv
    score = jnp.einsum("nlq,nmq->nlm", q, k) * scale
    score = jax.nn.softmax(score, axis=-1)
    return jnp.einsum("nlm,nmv->nlv", score, v)


if __name__ == "__main__":
    # Module hyperparameters (as in the PyTorch __init__ defaults).
    dim_in, dim_q, dim_k, dim_v = 6, 2, 2, 3
    scale = dim_k ** (-0.5)

    # Small deterministic shapes: batch=2, seq=128, feature=6.
    n, seq_len = 2, 128

    key = jax.random.PRNGKey(0)
    kx, kwq, kbq, kwk, kbk, kwv, kbv = jax.random.split(key, 7)

    x = jax.random.normal(kx, (n, seq_len, dim_in), dtype=jnp.float32)

    # Deterministic parameter init (nn.Linear-style uniform(-1/sqrt(in), 1/sqrt(in))).
    bound = 1.0 / (dim_in ** 0.5)
    wq = jax.random.uniform(kwq, (dim_q, dim_in), jnp.float32, -bound, bound)
    bq = jax.random.uniform(kbq, (dim_q,), jnp.float32, -bound, bound)
    wk = jax.random.uniform(kwk, (dim_k, dim_in), jnp.float32, -bound, bound)
    bk = jax.random.uniform(kbk, (dim_k,), jnp.float32, -bound, bound)
    wv = jax.random.uniform(kwv, (dim_v, dim_in), jnp.float32, -bound, bound)
    bv = jax.random.uniform(kbv, (dim_v,), jnp.float32, -bound, bound)

    # Parameter re-orientation happens once, at setup (not per forward call).
    params = prepare_attention_params(wq, bq, wk, bk, wv, bv)

    out = attention_forward(x, params, scale=scale)
    out = jax.block_until_ready(out)

    ref = attention_ref(x, wq, bq, wk, bk, wv, bv, scale=scale)
    assert out.shape == (n, seq_len, dim_v)
    # approx=True reciprocal in the softmax -> slightly looser tolerance.
    max_diff = jnp.max(jnp.abs(out - ref))
    assert jnp.allclose(out, ref, atol=2e-3, rtol=2e-3), (
        f"mismatch vs reference (max abs diff {max_diff})")

    print("KERNEL_OK")
</pallas_src>

<mosaic_0001>
module attributes {stable_mosaic.version = 11 : i64} {
  func.func @_attention_kernel(%arg0: i32, %arg1: memref<2x128x6xf32, #tpu.memory_space<vmem>>, %arg2: memref<6x2xf32, #tpu.memory_space<vmem>>, %arg3: memref<1x2xf32, #tpu.memory_space<vmem>>, %arg4: memref<6x6xf32, #tpu.memory_space<vmem>>, %arg5: memref<6x1xf32, #tpu.memory_space<vmem>>, %arg6: memref<2x3x128xf32, #tpu.memory_space<vmem>>) attributes {dimension_semantics = [#tpu.dimension_semantics<parallel>], iteration_bounds = array<i64: 1>, scalar_prefetch = 0 : i64, scratch_operands = 0 : i64, tpu.core_type = #tpu.core_type<tc>, window_params = [{transform_indices = @transform_0, window_bounds = array<i64: 2, 128, 6>}, {pipeline_mode = #tpu.pipeline_mode<synchronous>, transform_indices = @transform_1, window_bounds = array<i64: 6, 2>}, {pipeline_mode = #tpu.pipeline_mode<synchronous>, transform_indices = @transform_2, window_bounds = array<i64: 1, 2>}, {pipeline_mode = #tpu.pipeline_mode<synchronous>, transform_indices = @transform_3, window_bounds = array<i64: 6, 6>}, {pipeline_mode = #tpu.pipeline_mode<synchronous>, transform_indices = @transform_4, window_bounds = array<i64: 6, 1>}, {transform_indices = @transform_5, window_bounds = array<i64: 2, 3, 128>}]} {
    %c0 = arith.constant 0 : index
    %c0_0 = arith.constant 0 : index
    %0 = vector.load %arg2[%c0, %c0_0] : memref<6x2xf32, #tpu.memory_space<vmem>>, vector<6x2xf32>
    %c0_1 = arith.constant 0 : index
    %c0_2 = arith.constant 0 : index
    %1 = vector.load %arg4[%c0_1, %c0_2] : memref<6x6xf32, #tpu.memory_space<vmem>>, vector<6x6xf32>
    %c0_3 = arith.constant 0 : index
    %c0_4 = arith.constant 0 : index
    %2 = vector.load %arg3[%c0_3, %c0_4] : memref<1x2xf32, #tpu.memory_space<vmem>>, vector<1x2xf32>
    %3 = vector.shape_cast %2 : vector<1x2xf32> to vector<1x2xf32>
    %4 = vector.broadcast %3 : vector<1x2xf32> to vector<128x2xf32>
    %c0_5 = arith.constant 0 : index
    %c0_6 = arith.constant 0 : index
    %5 = vector.load %arg5[%c0_5, %c0_6] : memref<6x1xf32, #tpu.memory_space<vmem>>, vector<6x1xf32>
    %6 = vector.shape_cast %5 : vector<6x1xf32> to vector<6x1xf32>
    %7 = vector.broadcast %6 : vector<6x1xf32> to vector<6x128xf32>
    %c0_7 = arith.constant 0 : index
    %c0_8 = arith.constant 0 : index
    %c0_9 = arith.constant 0 : index
    %8 = vector.load %arg1[%c0_7, %c0_8, %c0_9] : memref<2x128x6xf32, #tpu.memory_space<vmem>>, vector<1x128x6xf32>
    %9 = vector.shape_cast %8 : vector<1x128x6xf32> to vector<128x6xf32>
    %cst = arith.constant dense<0.000000e+00> : vector<128x2xf32>
    %10 = tpu.matmul %9, %0, %cst {dimension_numbers = #tpu.dot_dimension_numbers<[1], [0], [0], [1], [0, 0, 1, 1], [], []>} : vector<128x6xf32>, vector<6x2xf32>, vector<128x2xf32> -> vector<128x2xf32>
    %11 = arith.addf %10, %4 : vector<128x2xf32>
    %cst_10 = arith.constant 0.707106769 : f32
    %12 = vector.broadcast %cst_10 : f32 to vector<128x2xf32>
    %13 = arith.mulf %11, %12 : vector<128x2xf32>
    %cst_11 = arith.constant dense<0.000000e+00> : vector<6x128xf32>
    %14 = tpu.matmul %1, %9, %cst_11 {dimension_numbers = #tpu.dot_dimension_numbers<[1], [1], [0], [0], [0, 0, 1, 0], [], []>} : vector<6x6xf32>, vector<128x6xf32>, vector<6x128xf32> -> vector<6x128xf32>
    %15 = arith.addf %14, %7 : vector<6x128xf32>
    %16 = vector.extract_strided_slice %15 {offsets = [0, 0], sizes = [2, 128], strides = [1, 1]} : vector<6x128xf32> to vector<2x128xf32>
    %17 = vector.extract_strided_slice %15 {offsets = [2, 0], sizes = [4, 128], strides = [1, 1]} : vector<6x128xf32> to vector<4x128xf32>
    %cst_12 = arith.constant dense<0.000000e+00> : vector<128x128xf32>
    %18 = tpu.matmul %13, %16, %cst_12 {dimension_numbers = #tpu.dot_dimension_numbers<[1], [0], [0], [1], [0, 0, 1, 1], [], []>} : vector<128x2xf32>, vector<2x128xf32>, vector<128x128xf32> -> vector<128x128xf32>
    %cst_13 = arith.constant dense<0xFF800000> : vector<128xf32>
    %19 = vector.multi_reduction <maximumf>, %18, %cst_13 [1] : vector<128x128xf32> to vector<128xf32>
    %20 = vector.shape_cast %19 : vector<128xf32> to vector<128x1xf32>
    %21 = vector.broadcast %20 : vector<128x1xf32> to vector<128x128xf32>
    %22 = arith.subf %18, %21 : vector<128x128xf32>
    %23 = math.exp %22 : vector<128x128xf32>
    %cst_14 = arith.constant dense<0.000000e+00> : vector<4x128xf32>
    %24 = tpu.matmul %17, %23, %cst_14 {dimension_numbers = #tpu.dot_dimension_numbers<[1], [1], [0], [0], [0, 0, 1, 0], [], []>} : vector<4x128xf32>, vector<128x128xf32>, vector<4x128xf32> -> vector<4x128xf32>
    %25 = vector.extract_strided_slice %24 {offsets = [3, 0], sizes = [1, 128], strides = [1, 1]} : vector<4x128xf32> to vector<1x128xf32>
    %26 = tpu.reciprocal %25 {approx = true} : vector<1x128xf32> -> vector<1x128xf32>
    %27 = vector.extract_strided_slice %24 {offsets = [0, 0], sizes = [3, 128], strides = [1, 1]} : vector<4x128xf32> to vector<3x128xf32>
    %28 = vector.broadcast %26 : vector<1x128xf32> to vector<3x128xf32>
    %29 = arith.mulf %27, %28 : vector<3x128xf32>
    %c0_15 = arith.constant 0 : index
    %c0_16 = arith.constant 0 : index
    %c0_17 = arith.constant 0 : index
    %30 = vector.load %arg6[%c0_15, %c0_16, %c0_17] : memref<2x3x128xf32, #tpu.memory_space<vmem>>, vector<1x3x128xf32>
    %31 = vector.shape_cast %30 : vector<1x3x128xf32> to vector<3x128xf32>
    %32 = vector.shape_cast %29 : vector<3x128xf32> to vector<1x3x128xf32>
    tpu.vector_store %arg6[%c0_15, %c0_16, %c0_17], %32 {strides = array<i32>} : memref<2x3x128xf32, #tpu.memory_space<vmem>>, vector<1x3x128xf32>,
    %c1 = arith.constant 1 : index
    %c0_18 = arith.constant 0 : index
    %c0_19 = arith.constant 0 : index
    %33 = vector.load %arg1[%c1, %c0_18, %c0_19] : memref<2x128x6xf32, #tpu.memory_space<vmem>>, vector<1x128x6xf32>
    %34 = vector.shape_cast %33 : vector<1x128x6xf32> to vector<128x6xf32>
    %cst_20 = arith.constant dense<0.000000e+00> : vector<128x2xf32>
    %35 = tpu.matmul %34, %0, %cst_20 {dimension_numbers = #tpu.dot_dimension_numbers<[1], [0], [0], [1], [0, 0, 1, 1], [], []>} : vector<128x6xf32>, vector<6x2xf32>, vector<128x2xf32> -> vector<128x2xf32>
    %36 = arith.addf %35, %4 : vector<128x2xf32>
    %cst_21 = arith.constant 0.707106769 : f32
    %37 = vector.broadcast %cst_21 : f32 to vector<128x2xf32>
    %38 = arith.mulf %36, %37 : vector<128x2xf32>
    %cst_22 = arith.constant dense<0.000000e+00> : vector<6x128xf32>
    %39 = tpu.matmul %1, %34, %cst_22 {dimension_numbers = #tpu.dot_dimension_numbers<[1], [1], [0], [0], [0, 0, 1, 0], [], []>} : vector<6x6xf32>, vector<128x6xf32>, vector<6x128xf32> -> vector<6x128xf32>
    %40 = arith.addf %39, %7 : vector<6x128xf32>
    %41 = vector.extract_strided_slice %40 {offsets = [0, 0], sizes = [2, 128], strides = [1, 1]} : vector<6x128xf32> to vector<2x128xf32>
    %42 = vector.extract_strided_slice %40 {offsets = [2, 0], sizes = [4, 128], strides = [1, 1]} : vector<6x128xf32> to vector<4x128xf32>
    %cst_23 = arith.constant dense<0.000000e+00> : vector<128x128xf32>
    %43 = tpu.matmul %38, %41, %cst_23 {dimension_numbers = #tpu.dot_dimension_numbers<[1], [0], [0], [1], [0, 0, 1, 1], [], []>} : vector<128x2xf32>, vector<2x128xf32>, vector<128x128xf32> -> vector<128x128xf32>
    %cst_24 = arith.constant dense<0xFF800000> : vector<128xf32>
    %44 = vector.multi_reduction <maximumf>, %43, %cst_24 [1] : vector<128x128xf32> to vector<128xf32>
    %45 = vector.shape_cast %44 : vector<128xf32> to vector<128x1xf32>
    %46 = vector.broadcast %45 : vector<128x1xf32> to vector<128x128xf32>
    %47 = arith.subf %43, %46 : vector<128x128xf32>
    %48 = math.exp %47 : vector<128x128xf32>
    %cst_25 = arith.constant dense<0.000000e+00> : vector<4x128xf32>
    %49 = tpu.matmul %42, %48, %cst_25 {dimension_numbers = #tpu.dot_dimension_numbers<[1], [1], [0], [0], [0, 0, 1, 0], [], []>} : vector<4x128xf32>, vector<128x128xf32>, vector<4x128xf32> -> vector<4x128xf32>
    %50 = vector.extract_strided_slice %49 {offsets = [3, 0], sizes = [1, 128], strides = [1, 1]} : vector<4x128xf32> to vector<1x128xf32>
    %51 = tpu.reciprocal %50 {approx = true} : vector<1x128xf32> -> vector<1x128xf32>
    %52 = vector.extract_strided_slice %49 {offsets = [0, 0], sizes = [3, 128], strides = [1, 1]} : vector<4x128xf32> to vector<3x128xf32>
    %53 = vector.broadcast %51 : vector<1x128xf32> to vector<3x128xf32>
    %54 = arith.mulf %52, %53 : vector<3x128xf32>
    %c1_26 = arith.constant 1 : index
    %c0_27 = arith.constant 0 : index
    %c0_28 = arith.constant 0 : index
    %55 = vector.load %arg6[%c1_26, %c0_27, %c0_28] : memref<2x3x128xf32, #tpu.memory_space<vmem>>, vector<1x3x128xf32>
    %56 = vector.shape_cast %55 : vector<1x3x128xf32> to vector<3x128xf32>
    %57 = vector.shape_cast %54 : vector<3x128xf32> to vector<1x3x128xf32>
    tpu.vector_store %arg6[%c1_26, %c0_27, %c0_28], %57 {strides = array<i32>} : memref<2x3x128xf32, #tpu.memory_space<vmem>>, vector<1x3x128xf32>,
    return
  }
  func.func @transform_0(%arg0: i32) -> (i32, i32, i32) {
    %c0_i32 = arith.constant 0 : i32
    %c0_i32_0 = arith.constant 0 : i32
    %c0_i32_1 = arith.constant 0 : i32
    return %arg0, %c0_i32, %c0_i32_0 : i32, i32, i32
  }
  func.func @transform_1(%arg0: i32) -> (i32, i32) {
    %c0_i32 = arith.constant 0 : i32
    %c0_i32_0 = arith.constant 0 : i32
    %c0_i32_1 = arith.constant 0 : i32
    return %c0_i32, %c0_i32_0 : i32, i32
  }
  func.func @transform_2(%arg0: i32) -> (i32, i32) {
    %c0_i32 = arith.constant 0 : i32
    %c0_i32_0 = arith.constant 0 : i32
    %c0_i32_1 = arith.constant 0 : i32
    return %c0_i32, %c0_i32_0 : i32, i32
  }
  func.func @transform_3(%arg0: i32) -> (i32, i32) {
    %c0_i32 = arith.constant 0 : i32
    %c0_i32_0 = arith.constant 0 : i32
    %c0_i32_1 = arith.constant 0 : i32
    return %c0_i32, %c0_i32_0 : i32, i32
  }
  func.func @transform_4(%arg0: i32) -> (i32, i32) {
    %c0_i32 = arith.constant 0 : i32
    %c0_i32_0 = arith.constant 0 : i32
    %c0_i32_1 = arith.constant 0 : i32
    return %c0_i32, %c0_i32_0 : i32, i32
  }
  func.func @transform_5(%arg0: i32) -> (i32, i32, i32) {
    %c0_i32 = arith.constant 0 : i32
    %c0_i32_0 = arith.constant 0 : i32
    %c0_i32_1 = arith.constant 0 : i32
    return %arg0, %c0_i32, %c0_i32_0 : i32, i32, i32
  }
}

</mosaic_0001>

<bundles_post_ra>
// kernel: _attention_fwd.1
= control target key start
LH: loop header
LB: loop body
LE: loop exit
PB: predicated region body
PF: predicated region fallthrough
CT: control target
= control target key end

     0   :  { %vm100_vm0 = vcmask 1045504   ;;  %vm51_vm1 = vcmask 48128   ;;  %v2036_v3 = vmov 0.0|0.0   ;;  %v2037_v14 = vmov 0   ;;  %s2504_s1 = inlined_call_operand.vmem [shape: f32[6,2], index: 1, kind: input, shape index: {}]   ;;  %s2505_s0 = inlined_call_operand.vmem [shape: f32[2,128,6], index: 0, kind: input, shape index: {}]   ;;  %s2506_s4 = inlined_call_operand.vmem [shape: f32[6,1], index: 4, kind: input, shape index: {}]   ;;  %s2507_s3 = inlined_call_operand.vmem [shape: f32[6,6], index: 3, kind: input, shape index: {}]   ;;  %s2508_s2 = inlined_call_operand.vmem [shape: f32[1,2], index: 2, kind: input, shape index: {}]   ;;  %s2509_s5 = inlined_call_operand.vmem [shape: f32[2,3,128], index: 5, kind: output, shape index: {}]  }
   0x1   :  { %v2073_v0 = vld [vmem:[%s2504_s1] sm:$0x3f]  ;;  %v36_v2 = vld [vmem:[%s2505_s0 + $0x8] sm:$0xff]  ;;  %v37_v4 = vld [vmem:[%s2505_s0 + $0x10] sm:$0xff]  ;;  %1967 = vset.pattern.permute.xlu0 %v2037_v14  ;;  %vm2038_vm3 = vmmov 0   ;;  %v2039_v25 = vmov 0.0  }
   0x2   :  { %v35_v1 = vld [vmem:[%s2505_s0] sm:$0xff]  ;;  %1607 = vmatprep.subr.msk.mxu1 %vm100_vm0, %v2073_v0  ;;  %vm2094_vm2 = vmpackc.low %vm51_vm1, %vm51_vm1  ;;  %v38_v7 = vld [vmem:[%s2505_s0 + $0x18] sm:$0xff]  ;;  %vm338_vm4 = vcmask 15360   ;;  %vm387_vm5 = vcmask 1041408  }
   0x3   :  { %1609 = vmatprep.mubr.msk.f32.mxu1 %vm51_vm1, %v35_v1  ;;  %1608 = vmatpush3.msk.msra.mxu1 %vm100_vm0, %v2073_v0  ;;  %v1852_v5 = vpack.c.bf16 %v36_v2, %v35_v1  ;;  %v39_v8 = vld [vmem:[%s2505_s0 + $0x20] sm:$0xff]  ;;  %v40_v9 = vld [vmem:[%s2505_s0 + $0x28] sm:$0xff]  ;;  %v41_v10 = vld [vmem:[%s2505_s0 + $0x30] sm:$0xff]  ;;  %v1856_v11 = vpack.c.bf16 %v38_v7, %v37_v4 }
   0x4   :  { %1610 = vmatmul.mubr.msk.f32.vlgmr.msra.gmra.mrb[0].mxu1 %vm51_vm1, %v36_v2  ;;  %1851 = vmatprep.subr.bf16.mxu1 %v2036_v3  ;;  %v42_v12 = vld [vmem:[%s2505_s0 + $0x38] sm:$0xff]  ;;  %v43_v13 = vld [vmem:[%s2505_s0 + $0x40] sm:$0xff]  ;;  %v44_v16 = vld [vmem:[%s2505_s0 + $0x48] sm:$0xff]  ;;  %v1860_v18 = vpack.c.bf16 %v40_v9, %v39_v8 }
   0x5   :  { %1612 = vmatprep.mubr.msk.f32.mxu1 %vm51_vm1, %v37_v4  ;;  %v29_v15 = vld [vmem:[%s2506_s4] sm:$0x3f]  ;;  %v45_v17 = vld [vmem:[%s2505_s0 + $0x50] sm:$0xff]  ;;  %v46_v19 = vld [vmem:[%s2505_s0 + $0x58] sm:$0xff]  ;;  %v1864_v23 = vpack.c.bf16 %v42_v12, %v41_v10  ;;  %v1868_v26 = vpack.c.bf16 %v44_v16, %v43_v13 }
   0x6   :  { %32 = vperm.xlu0 %1967, %v29_v15   ;;  %v47_v20 = vld [vmem:[%s2505_s0 + $0x60] sm:$0xff]  ;;  %v48_v21 = vld [vmem:[%s2505_s0 + $0x68] sm:$0xff]  ;;  %v49_v22 = vld [vmem:[%s2505_s0 + $0x70] sm:$0xff]  ;;  %v1872_v27 = vpack.c.bf16 %v46_v19, %v45_v17 }
   0x7   :  { %v50_v24 = vld [vmem:[%s2505_s0 + $0x78] sm:$0xff]  ;;  %v1876_v28 = vpack.c.bf16 %v48_v21, %v47_v20  ;;  %v21_v30 = vld [vmem:[%s2507_s3] sm:$0x3f]  ;;  %v1404_v32 = vld [vmem:[%s2505_s0 + $0x88] sm:$0xff] }
   0x8   :  { %1613 = vmatmul.mubr.msk.f32.gmra.mrb[2].mxu1 %vm51_vm1, %v38_v7  ;;  %v1880_v29 = vpack.c.bf16 %v50_v24, %v49_v22  ;;  %v1403_v31 = vld [vmem:[%s2505_s0 + $0x80] sm:$0xff]  ;;  %v1405_v34 = vld [vmem:[%s2505_s0 + $0x90] sm:$0xff]  ;;  %v1406_v35 = vld [vmem:[%s2505_s0 + $0x98] sm:$0xff] }
   0x9   :  { %1615 = vmatprep.mubr.msk.f32.mxu1 %vm51_vm1, %v39_v8  ;;  %v1908_v33 = vpack.c.bf16 %v1404_v32, %v1403_v31  ;;  %v1407_v36 = vld [vmem:[%s2505_s0 + $0xa0] sm:$0xff]  ;;  %v1912_v37 = vpack.c.bf16 %v1406_v35, %v1405_v34  ;;  %v1408_v38 = vld [vmem:[%s2505_s0 + $0xa8] sm:$0xff]  ;;  %v1409_v39 = vld [vmem:[%s2505_s0 + $0xb0] sm:$0xff] }
   0xa   :  { %1854 = vmatpush3.bf16.xpose.msk.msra.mxu1 %vm2094_vm2, %v1852_v5  ;;  %v1410_v40 = vld [vmem:[%s2505_s0 + $0xb8] sm:$0xff]  ;;  %v1411_v41 = vld [vmem:[%s2505_s0 + $0xc0] sm:$0xff]  ;;  %v1916_v42 = vpack.c.bf16 %v1408_v38, %v1407_v36  ;;  %v1412_v43 = vld [vmem:[%s2505_s0 + $0xc8] sm:$0xff] }
   0xb   :  { %1855 = vmatprep.subr.bf16.mxu1 %v2036_v3  ;;  %v1413_v44 = vld [vmem:[%s2505_s0 + $0xd0] sm:$0xff]  ;;  %v1414_v45 = vld [vmem:[%s2505_s0 + $0xd8] sm:$0xff]  ;;  %v1415_v46 = vld [vmem:[%s2505_s0 + $0xe0] sm:$0xff]  ;;  %v1920_v47 = vpack.c.bf16 %v1410_v40, %v1409_v39  ;;  %v1924_v51 = vpack.c.bf16 %v1412_v43, %v1411_v41 }
   0xc   :  { %1616 = vmatmul.mubr.msk.f32.gmra.mrb[4].mxu1 %vm51_vm1, %v40_v9  ;;  %v1416_v48 = vld [vmem:[%s2505_s0 + $0xe8] sm:$0xff]  ;;  %v1417_v49 = vld [vmem:[%s2505_s0 + $0xf0] sm:$0xff]  ;;  %v1418_v50 = vld [vmem:[%s2505_s0 + $0xf8] sm:$0xff]  ;;  %v1928_v52 = vpack.c.bf16 %v1414_v45, %v1413_v44 }
   0xd   :  { %1618 = vmatprep.mubr.msk.f32.mxu1 %vm51_vm1, %v41_v10  ;;  %v1932_v53 = vpack.c.bf16 %v1416_v48, %v1415_v46  ;;  %v1936_v54 = vpack.c.bf16 %v1418_v50, %v1417_v49  ;;  %v2280_v55 = vld [vmem:[%s2508_s2] ss:$0 sm:$0xff] }
  0x10   :  { %1619 = vmatmul.mubr.msk.f32.gmra.mrb[6].mxu1 %vm51_vm1, %v42_v12 }
  0x11   :  { %1621 = vmatprep.mubr.msk.f32.mxu1 %vm51_vm1, %v43_v13 }
  0x12   :  { %1858 = vmatpush3.bf16.xpose.msk.msra.mxu1 %vm2094_vm2, %v1856_v11 }
  0x13   :  { %1859 = vmatprep.subr.bf16.mxu1 %v2036_v3 }
  0x14   :  { %1622 = vmatmul.mubr.msk.f32.gmra.mrb[8].mxu1 %vm51_vm1, %v44_v16 }
  0x15   :  { %1624 = vmatprep.mubr.msk.f32.mxu1 %vm51_vm1, %v45_v17 }
  0x18   :  { %1625 = vmatmul.mubr.msk.f32.gmra.mrb[10].mxu1 %vm51_vm1, %v46_v19 }
  0x19   :  { %1627 = vmatprep.mubr.msk.f32.mxu1 %vm51_vm1, %v47_v20 }
  0x1a   :  { %1862 = vmatpush3.bf16.xpose.msk.msra.mxu1 %vm2094_vm2, %v1860_v18 }
  0x1b   :  { %1863 = vmatprep.subr.bf16.mxu1 %v2036_v3 }
  0x1c   :  { %1628 = vmatmul.mubr.msk.f32.gmra.mrb[12].mxu1 %vm51_vm1, %v48_v21 }
  0x1d   :  { %1630 = vmatprep.mubr.msk.f32.mxu1 %vm51_vm1, %v49_v22 }
  0x20   :  { %1631 = vmatmul.mubr.msk.f32.gmra.mrb[14].mxu1 %vm51_vm1, %v50_v24 }
  0x21   :  { %1665 = vmatprep.mubr.msk.f32.mxu1 %vm2038_vm3, %v2039_v25 }
  0x22   :  { %1866 = vmatpush3.bf16.xpose.msk.msra.mxu1 %vm2094_vm2, %v1864_v23 }
  0x23   :  { %1867 = vmatprep.subr.bf16.mxu1 %v2036_v3 }
  0x2a   :  { %1870 = vmatpush3.bf16.xpose.msk.msra.mxu1 %vm2094_vm2, %v1868_v26 }
  0x2b   :  { %1871 = vmatprep.subr.bf16.mxu1 %v2036_v3 }
  0x32   :  { %1874 = vmatpush3.bf16.xpose.msk.msra.mxu1 %vm2094_vm2, %v1872_v27 }
  0x33   :  { %1875 = vmatprep.subr.bf16.mxu1 %v2036_v3 }
  0x3a   :  { %1878 = vmatpush3.bf16.xpose.msk.msra.mxu1 %vm2094_vm2, %v1876_v28 }
  0x3b   :  { %1879 = vmatprep.subr.bf16.mxu1 %v2036_v3 }
  0x42   :  { %1882 = vmatpush3.bf16.xpose.msk.msra.mxu1 %vm2094_vm2, %v1880_v29 }
  0x43   :  { %1729 = vmatprep.subr.msk.mxu1 %vm100_vm0, %v2073_v0 }
  0x49   :  { %1666 = vmatmul.mubr.msk.f32.vlgmr.msra.gmra.mrb[16].mxu1 %vm51_vm1, %v21_v30 }
  0x4a   :  { %1730 = vmatpush3.msk.msra.mxu1 %vm100_vm0, %v2073_v0  ;;  %1731 = vmatprep.mubr.msk.f32.mxu1 %vm51_vm1, %v1403_v31 }
  0x4b   :  { %1907 = vmatprep.subr.bf16.mxu1 %v2036_v3 }
  0x4d   :  { %1732 = vmatmul.mubr.msk.f32.vlgmr.msra.gmra.mrb[18].mxu1 %vm51_vm1, %v1404_v32 }
  0x4e   :  { %1734 = vmatprep.mubr.msk.f32.mxu1 %vm51_vm1, %v1405_v34 }
  0x51   :  { %1910 = vmatpush3.bf16.xpose.msk.msra.mxu1 %vm2094_vm2, %v1908_v33 }
  0x52   :  { %1911 = vmatprep.subr.bf16.mxu1 %v2036_v3  ;;  %1735 = vmatmul.mubr.msk.f32.gmra.mrb[20].mxu1 %vm51_vm1, %v1406_v35 }
  0x53   :  { %1737 = vmatprep.mubr.msk.f32.mxu1 %vm51_vm1, %v1407_v36 }
  0x56   :  { %1738 = vmatmul.mubr.msk.f32.gmra.mrb[22].mxu1 %vm51_vm1, %v1408_v38 }
  0x57   :  { %1740 = vmatprep.mubr.msk.f32.mxu1 %vm51_vm1, %v1409_v39 }
  0x59   :  { %1914 = vmatpush3.bf16.xpose.msk.msra.mxu1 %vm2094_vm2, %v1912_v37 }
  0x5a   :  { %1915 = vmatprep.subr.bf16.mxu1 %v2036_v3  ;;  %1741 = vmatmul.mubr.msk.f32.gmra.mrb[24].mxu1 %vm51_vm1, %v1410_v40 }
  0x5b   :  { %1743 = vmatprep.mubr.msk.f32.mxu1 %vm51_vm1, %v1411_v41 }
  0x5e   :  { %1744 = vmatmul.mubr.msk.f32.gmra.mrb[26].mxu1 %vm51_vm1, %v1412_v43 }
  0x5f   :  { %1746 = vmatprep.mubr.msk.f32.mxu1 %vm51_vm1, %v1413_v44 }
  0x61   :  { %1918 = vmatpush3.bf16.xpose.msk.msra.mxu1 %vm2094_vm2, %v1916_v42 }
  0x62   :  { %1919 = vmatprep.subr.bf16.mxu1 %v2036_v3  ;;  %1747 = vmatmul.mubr.msk.f32.gmra.mrb[28].mxu1 %vm51_vm1, %v1414_v45 }
  0x63   :  { %1749 = vmatprep.mubr.msk.f32.mxu1 %vm51_vm1, %v1415_v46 }
  0x66   :  { %1750 = vmatmul.mubr.msk.f32.gmra.mrb[30].mxu1 %vm51_vm1, %v1416_v48 }
  0x67   :  { %1752 = vmatprep.mubr.msk.f32.mxu1 %vm51_vm1, %v1417_v49 }
  0x69   :  { %1922 = vmatpush3.bf16.xpose.msk.msra.mxu1 %vm2094_vm2, %v1920_v47 }
  0x6a   :  { %1923 = vmatprep.subr.bf16.mxu1 %v2036_v3  ;;  %1753 = vmatmul.mubr.msk.f32.gmra.mrb[32].mxu1 %vm51_vm1, %v1418_v50 }
  0x6b   :  { %1787 = vmatprep.mubr.msk.f32.mxu1 %vm2038_vm3, %v2039_v25 }
  0x71   :  { %1926 = vmatpush3.bf16.xpose.msk.msra.mxu1 %vm2094_vm2, %v1924_v51 }
  0x72   :  { %1927 = vmatprep.subr.bf16.mxu1 %v2036_v3 }
  0x79   :  { %1930 = vmatpush3.bf16.xpose.msk.msra.mxu1 %vm2094_vm2, %v1928_v52 }
  0x7a   :  { %1931 = vmatprep.subr.bf16.mxu1 %v2036_v3 }
  0x81   :  { %1934 = vmatpush3.bf16.xpose.msk.msra.mxu1 %vm2094_vm2, %v1932_v53 }
  0x82   :  { %1935 = vmatprep.subr.bf16.mxu1 %v2036_v3 }
  0x85   :  { %v2284_v11 = vpop.permute.xlu0 %32 }
  0x89   :  { %1938 = vmatpush3.bf16.xpose.msk.msra.mxu1 %vm2094_vm2, %v1936_v54 }
  0x90   :  { %1788 = vmatmul.mubr.msk.f32.vlgmr.msra.gmra.mrb[34].mxu1 %vm51_vm1, %v21_v30 }
  0xd7   :  { %v1611_v56 = vpop.f32.mrb[0].mxu1 }
  0xd8   :  { %v170_v57 = vpop.f32.mrb[1].mxu1  ;;  %v176_v12 = vadd.f32 %v1611_v56, %v2280_v55 }
  0xd9   :  { %v171_v58 = vadd.f32 %v2280_v55, %v170_v57 }
  0xda   :  { %v250_v17 = vmul.f32 0.70710677, %v176_v12 }
  0xdb   :  { %v249_v59 = vmul.f32 0.70710677, %v171_v58  ;;  %v1614_v60 = vpop.f32.mrb[2].mxu1 }
  0xdc   :  { %v180_v61 = vpop.f32.mrb[3].mxu1  ;;  %v186_v18 = vadd.f32 %v1614_v60, %v2280_v55 }
  0xdd   :  { %1670 = vmatprep.mubr.msk.f32.mxu0 %vm338_vm4, %v249_v59  ;;  %v181_v13 = vadd.f32 %v2280_v55, %v180_v61 }
  0xde   :  { %v252_v23 = vmul.f32 0.70710677, %v186_v18 }
  0xdf   :  { %v1617_v62 = vpop.f32.mrb[4].mxu1  ;;  %v251_v19 = vmul.f32 0.70710677, %v181_v13 }
  0xe0   :  { %v190_v63 = vpop.f32.mrb[5].mxu1  ;;  %v196_v24 = vadd.f32 %v1617_v62, %v2280_v55 }
  0xe1   :  { %v191_v20 = vadd.f32 %v2280_v55, %v190_v63 }
  0xe2   :  { %v254_v30 = vmul.f32 0.70710677, %v196_v24 }
  0xe3   :  { %v1620_v0 = vpop.f32.mrb[6].mxu1  ;;  %v253_v26 = vmul.f32 0.70710677, %v191_v20 }
  0xe4   :  { %v200_v1 = vpop.f32.mrb[7].mxu1  ;;  %v206_v31 = vadd.f32 %v1620_v0, %v2280_v55 }
  0xe5   :  { %v201_v27 = vadd.f32 %v2280_v55, %v200_v1 }
  0xe6   :  { %v256_v36 = vmul.f32 0.70710677, %v206_v31 }
  0xe7   :  { %v1623_v2 = vpop.f32.mrb[8].mxu1  ;;  %v255_v32 = vmul.f32 0.70710677, %v201_v27 }
  0xe8   :  { %v210_v4 = vpop.f32.mrb[9].mxu1  ;;  %v216_v37 = vadd.f32 %v1623_v2, %v2280_v55 }
  0xe9   :  { %v211_v33 = vadd.f32 %v2280_v55, %v210_v4 }
  0xea   :  { %v258_v42 = vmul.f32 0.70710677, %v216_v37 }
  0xeb   :  { %v1626_v5 = vpop.f32.mrb[10].mxu1  ;;  %v257_v38 = vmul.f32 0.70710677, %v211_v33 }
  0xec   :  { %v220_v6 = vpop.f32.mrb[11].mxu1  ;;  %v226_v43 = vadd.f32 %v1626_v5, %v2280_v55 }
  0xed   :  { %v221_v39 = vadd.f32 %v2280_v55, %v220_v6 }
  0xee   :  { %v260_v48 = vmul.f32 0.70710677, %v226_v43 }
  0xef   :  { %v1629_v7 = vpop.f32.mrb[12].mxu1  ;;  %v259_v44 = vmul.f32 0.70710677, %v221_v39 }
  0xf0   :  { %v230_v8 = vpop.f32.mrb[13].mxu1  ;;  %v236_v49 = vadd.f32 %v1629_v7, %v2280_v55 }
  0xf1   :  { %v231_v45 = vadd.f32 %v2280_v55, %v230_v8 }
  0xf2   :  { %v262_v54 = vmul.f32 0.70710677, %v236_v49 }
  0xf3   :  { %v1632_v9 = vpop.f32.mrb[14].mxu1  ;;  %v261_v50 = vmul.f32 0.70710677, %v231_v45 }
  0xf4   :  { %v240_v10 = vpop.f32.mrb[15].mxu1  ;;  %v246_v56 = vadd.f32 %v1632_v9, %v2280_v55 }
  0xf5   :  { %v241_v51 = vadd.f32 %v2280_v55, %v240_v10 }
  0xf6   :  { %v264_v60 = vmul.f32 0.70710677, %v246_v56 }
  0xf7   :  { %v263_v57 = vmul.f32 0.70710677, %v241_v51 }
 0x11c   :  { %v334_v14 = vpop.f32.mrb[16].mxu1 }
 0x11d   :  { %v2289_v15 = vadd.f32 %v334_v14, %v2284_v11  ;;  %v1667_v16 = vpop.f32.mrb[17].mxu1 }
 0x11f   :  { %1668 = vmatprep.subr.msk.mxu0 %vm387_vm5, %v2289_v15 }
 0x120   :  { %1669 = vmatpush3.msk.msra.mxu0 %vm387_vm5, %v2289_v15  ;;  %v2297_v21 = vpop.f32.mrb[18].mxu1 }
 0x121   :  { %1671 = vmatmul.mubr.msk.f32.vlgmr.msra.gmra.mrb[0].mxu0 %vm338_vm4, %v250_v17  ;;  %v2300_v22 = vpop.f32.mrb[19].mxu1  ;;  %1883 = vmatprep.subr.bf16.mxu0 %v2036_v3 }
 0x122   :  { %1673 = vmatprep.mubr.msk.f32.mxu0 %vm338_vm4, %v251_v19 }
 0x125   :  { %1674 = vmatmul.mubr.msk.f32.gmra.mrb[2].mxu0 %vm338_vm4, %v252_v23  ;;  %v2307_v28 = vpop.f32.mrb[20].mxu1 }
 0x126   :  { %1676 = vmatprep.mubr.msk.f32.mxu0 %vm338_vm4, %v253_v26  ;;  %v2310_v29 = vpop.f32.mrb[21].mxu1 }
 0x129   :  { %1677 = vmatmul.mubr.msk.f32.gmra.mrb[4].mxu0 %vm338_vm4, %v254_v30  ;;  %v2315_v34 = vpop.f32.mrb[22].mxu1 }
 0x12a   :  { %1679 = vmatprep.mubr.msk.f32.mxu0 %vm338_vm4, %v255_v32  ;;  %v2318_v35 = vpop.f32.mrb[23].mxu1 }
 0x12d   :  { %1680 = vmatmul.mubr.msk.f32.gmra.mrb[6].mxu0 %vm338_vm4, %v256_v36  ;;  %v2323_v40 = vpop.f32.mrb[24].mxu1 }
 0x12e   :  { %1682 = vmatprep.mubr.msk.f32.mxu0 %vm338_vm4, %v257_v38  ;;  %v2326_v41 = vpop.f32.mrb[25].mxu1 }
 0x131   :  { %1683 = vmatmul.mubr.msk.f32.gmra.mrb[8].mxu0 %vm338_vm4, %v258_v42  ;;  %v2331_v46 = vpop.f32.mrb[26].mxu1 }
 0x132   :  { %1685 = vmatprep.mubr.msk.f32.mxu0 %vm338_vm4, %v259_v44  ;;  %v2334_v47 = vpop.f32.mrb[27].mxu1 }
 0x135   :  { %1686 = vmatmul.mubr.msk.f32.gmra.mrb[10].mxu0 %vm338_vm4, %v260_v48  ;;  %v2339_v52 = vpop.f32.mrb[28].mxu1 }
 0x136   :  { %1688 = vmatprep.mubr.msk.f32.mxu0 %vm338_vm4, %v261_v50  ;;  %v2342_v53 = vpop.f32.mrb[29].mxu1 }
 0x139   :  { %1689 = vmatmul.mubr.msk.f32.gmra.mrb[12].mxu0 %vm338_vm4, %v262_v54  ;;  %v2346_v58 = vpop.f32.mrb[30].mxu1 }
 0x13a   :  { %1691 = vmatprep.mubr.msk.f32.mxu0 %vm338_vm4, %v263_v57  ;;  %v2349_v59 = vpop.f32.mrb[31].mxu1 }
 0x13d   :  { %1692 = vmatmul.mubr.msk.f32.gmra.mrb[14].mxu0 %vm338_vm4, %v264_v60  ;;  %v2352_v61 = vpop.f32.mrb[32].mxu1 }
 0x13e   :  { %v2354_v62 = vpop.f32.mrb[33].mxu1  ;;  %1726 = vmatprep.mubr.msk.f32.mxu0 %vm2038_vm3, %v2039_v25 }
 0x163   :  { %v2358_v63 = vpop.f32.mrb[34].mxu1 }
 0x164   :  { %v1789_v0 = vpop.f32.mrb[35].mxu1 }
 0x1f4   :  { %v1672_v1 = vpop.f32.mrb[0].mxu0 }
 0x1f5   :  { %538 = vmax.xlane.f32.xlu1 %v1672_v1  ;;  %v457_v2 = vpop.f32.mrb[1].mxu0 }
 0x1f6   :  { %536 = vmax.xlane.f32.xlu0 %v457_v2 }
 0x1f8   :  { %v1675_v4 = vpop.f32.mrb[2].mxu0 }
 0x1f9   :  { %542 = vmax.xlane.f32.xlu1 %v1675_v4  ;;  %v467_v5 = vpop.f32.mrb[3].mxu0 }
 0x1fc   :  { %v1678_v6 = vpop.f32.mrb[4].mxu0 }
 0x1fd   :  { %540 = vmax.xlane.f32.xlu1 %v467_v5  ;;  %v477_v7 = vpop.f32.mrb[5].mxu0 }
 0x200   :  { %v1681_v8 = vpop.f32.mrb[6].mxu0 }
 0x201   :  { %546 = vmax.xlane.f32.xlu1 %v1678_v6  ;;  %v487_v9 = vpop.f32.mrb[7].mxu0 }
 0x204   :  { %v2360_v10 = vpop.f32.mrb[8].mxu0 }
 0x205   :  { %544 = vmax.xlane.f32.xlu1 %v477_v7  ;;  %v2362_v12 = vpop.f32.mrb[9].mxu0 }
 0x208   :  { %v2364_v13 = vpop.f32.mrb[10].mxu0 }
 0x209   :  { %550 = vmax.xlane.f32.xlu1 %v1681_v8  ;;  %v2366_v14 = vpop.f32.mrb[11].mxu0 }
 0x20a   :  { %556 = vmax.xlane.f32.xlu0 %v2366_v14 }
 0x20c   :  { %v2369_v16 = vpop.f32.mrb[12].mxu0 }
 0x20d   :  { %548 = vmax.xlane.f32.xlu1 %v487_v9  ;;  %v2371_v17 = vpop.f32.mrb[13].mxu0 }
 0x20e   :  { %560 = vmax.xlane.f32.xlu0 %v2371_v17 }
 0x210   :  { %v2374_v18 = vpop.f32.mrb[14].mxu0 }
 0x211   :  { %552 = vmax.xlane.f32.xlu1 %v2362_v12  ;;  %v2377_v19 = vpop.f32.mrb[15].mxu0 }
 0x212   :  { %564 = vmax.xlane.f32.xlu0 %v2377_v19 }
 0x215   :  { %554 = vmax.xlane.f32.xlu1 %v2360_v10 }
 0x219   :  { %558 = vmax.xlane.f32.xlu1 %v2364_v13 }
 0x21d   :  { %562 = vmax.xlane.f32.xlu1 %v2369_v16 }
 0x221   :  { %566 = vmax.xlane.f32.xlu1 %v2374_v18 }
 0x282   :  { %v539_v20 = vpop.xlane.xlu1 %538 }
 0x283   :  { %v569_v23 = vsub.f32 %v1672_v1, %v539_v20  ;;  %v537_v24 = vpop.xlane.xlu0 %536 }
 0x284   :  { %v568_v26 = vsub.f32 %v457_v2, %v537_v24 }
 0x285   :  { %v586_v27 = vmul.f32 1.442695, %v569_v23 }
 0x286   :  { %v584_v30 = vmul.f32 1.442695, %v568_v26  ;;  %v543_v31 = vpop.xlane.xlu1 %542 }
 0x287   :  { %1968 = vpow2.f32 %v586_v27  ;;  %v571_v32 = vsub.f32 %v1675_v4, %v543_v31 }
 0x288   :  { %1970 = vpow2.f32 %v584_v30 }
 0x289   :  { %v590_v33 = vmul.f32 1.442695, %v571_v32 }
 0x28a   :  { %v541_v36 = vpop.xlane.xlu1 %540 }
 0x28b   :  { %v570_v37 = vsub.f32 %v467_v5, %v541_v36  ;;  %1972 = vpow2.f32 %v590_v33 }
 0x28d   :  { %v588_v38 = vmul.f32 1.442695, %v570_v37 }
 0x28e   :  { %v547_v39 = vpop.xlane.xlu1 %546 }
 0x28f   :  { %1974 = vpow2.f32 %v588_v38  ;;  %v573_v42 = vsub.f32 %v1678_v6, %v547_v39 }
 0x291   :  { %v1969_v43 = vpop.eup %1968  ;;  %v594_v45 = vmul.f32 1.442695, %v573_v42 }
 0x292   :  { %v1971_v44 = vpop.eup %1970  ;;  %v545_v48 = vpop.xlane.xlu1 %544 }
 0x293   :  { %v572_v49 = vsub.f32 %v477_v7, %v545_v48  ;;  %v1884_v50 = vpack.c.bf16 %v1969_v43, %v1971_v44  ;;  %1976 = vpow2.f32 %v594_v45 }
 0x295   :  { %v592_v51 = vmul.f32 1.442695, %v572_v49  ;;  %1885 = vmatpush3.bf16.xpose.msra.mxu0 %v1884_v50  ;;  %v1973_v57 = vpop.eup %1972 }
 0x296   :  { %v551_v54 = vpop.xlane.xlu1 %550  ;;  %1886 = vmatprep.subr.bf16.mxu0 %v2036_v3 }
 0x297   :  { %1978 = vpow2.f32 %v592_v51  ;;  %v575_v56 = vsub.f32 %v1681_v8, %v551_v54  ;;  %v557_v4 = vpop.xlane.xlu0 %556 }
 0x298   :  { %v578_v8 = vsub.f32 %v2366_v14, %v557_v4 }
 0x299   :  { %v1975_v60 = vpop.eup %1974  ;;  %v598_v0 = vmul.f32 1.442695, %v575_v56 }
 0x29a   :  { %v549_v1 = vpop.xlane.xlu1 %548  ;;  %v1887_v2 = vpack.c.bf16 %v1973_v57, %v1975_v60  ;;  %v604_v33 = vmul.f32 1.442695, %v578_v8 }
 0x29b   :  { %v574_v5 = vsub.f32 %v487_v9, %v549_v1  ;;  %1980 = vpow2.f32 %v598_v0  ;;  %v561_v26 = vpop.xlane.xlu0 %560 }
 0x29c   :  { %v580_v36 = vsub.f32 %v2371_v17, %v561_v26  ;;  %v837_v26 = vadd.f32 %v2280_v55, %v2310_v29  ;;  %v852_v29 = vadd.f32 %v2315_v34, %v2280_v55 }
 0x29d   :  { %v596_v6 = vmul.f32 1.442695, %v574_v5  ;;  %1888 = vmatpush3.bf16.xpose.msra.mxu0 %v1887_v2  ;;  %v1977_v23 = vpop.eup %1976 }
 0x29e   :  { %v553_v7 = vpop.xlane.xlu1 %552  ;;  %1889 = vmatprep.subr.bf16.mxu0 %v2036_v3  ;;  %v608_v43 = vmul.f32 1.442695, %v580_v36  ;;  %v887_v36 = vadd.f32 %v2280_v55, %v2349_v59  ;;  %v902_v59 = vadd.f32 %v2352_v61, %v2280_v55 }
 0x29f   :  { %1982 = vpow2.f32 %v596_v6  ;;  %v576_v20 = vsub.f32 %v2362_v12, %v553_v7  ;;  %v565_v12 = vpop.xlane.xlu0 %564  ;;  %v2401_v6 = vadd.f32 %v2358_v63, %v2284_v11  ;;  %v827_v7 = vadd.f32 %v2280_v55, %v2300_v22 }
 0x2a0   :  { %v842_v63 = vadd.f32 %v2307_v28, %v2280_v55  ;;  %v910_v28 = vmul.f32 0.70710677, %v852_v29 }
 0x2a1   :  { %v1979_v24 = vpop.eup %1978  ;;  %v600_v27 = vmul.f32 1.442695, %v576_v20  ;;  %v616_v20 = vrot.slane %v2289_v15, 2  ;;  %v907_v15 = vmul.f32 0.70710677, %v837_v26 }
 0x2a2   :  { %v555_v30 = vpop.xlane.xlu1 %554  ;;  %v1890_v31 = vpack.c.bf16 %v1977_v23, %v1979_v24  ;;  %v832_v23 = vadd.f32 %v2297_v21, %v2280_v55  ;;  %v905_v24 = vmul.f32 0.70710677, %v827_v7  ;;  %v847_v21 = vadd.f32 %v2280_v55, %v2318_v35 }
 0x2a3   :  { %v577_v32 = vsub.f32 %v2360_v10, %v555_v30  ;;  %1984 = vpow2.f32 %v600_v27  ;;  %v582_v10 = vsub.f32 %v2377_v19, %v565_v12  ;;  %v908_v22 = vmul.f32 0.70710677, %v842_v63 }
 0x2a4   :  { %v906_v11 = vmul.f32 0.70710677, %v832_v23  ;;  %v909_v8 = vmul.f32 0.70710677, %v847_v21  ;;  %v857_v27 = vadd.f32 %v2280_v55, %v2326_v41  ;;  %v862_v35 = vadd.f32 %v2323_v40, %v2280_v55 }
 0x2a5   :  { %v602_v9 = vmul.f32 1.442695, %v577_v32  ;;  %1891 = vmatpush3.bf16.xpose.msra.mxu0 %v1890_v31  ;;  %v1981_v39 = vpop.eup %1980  ;;  %v612_v49 = vmul.f32 1.442695, %v582_v10  ;;  %v867_v31 = vadd.f32 %v2280_v55, %v2334_v47  ;;  %v872_v41 = vadd.f32 %v2331_v46, %v2280_v55 }
 0x2a6   :  { %v559_v37 = vpop.xlane.xlu1 %558  ;;  %1892 = vmatprep.subr.bf16.mxu0 %v2036_v3  ;;  %v911_v30 = vmul.f32 0.70710677, %v857_v27  ;;  %v912_v34 = vmul.f32 0.70710677, %v862_v35  ;;  %v882_v47 = vadd.f32 %v2339_v52, %v2280_v55  ;;  %v897_v12 = vadd.f32 %v2280_v55, %v2354_v62 }
 0x2a7   :  { %1986 = vpow2.f32 %v602_v9  ;;  %v579_v38 = vsub.f32 %v2364_v13, %v559_v37  ;;  %v913_v32 = vmul.f32 0.70710677, %v867_v31  ;;  %v877_v9 = vadd.f32 %v2280_v55, %v2342_v53 }
 0x2a8   :  { %1988 = vpow2.f32 %v604_v33  ;;  %v914_v40 = vmul.f32 0.70710677, %v872_v41  ;;  %v916_v46 = vmul.f32 0.70710677, %v882_v47  ;;  %v892_v53 = vadd.f32 %v2346_v58, %v2280_v55 }
 0x2a9   :  { %v1983_v14 = vpop.eup %1982  ;;  %v606_v42 = vmul.f32 1.442695, %v579_v38  ;;  %v915_v33 = vmul.f32 0.70710677, %v877_v9  ;;  %v917_v37 = vmul.f32 0.70710677, %v887_v36  ;;  %v689_v62 = vlaneseq }
 0x2aa   :  { %v563_v44 = vpop.xlane.xlu1 %562  ;;  %v1893_v45 = vpack.c.bf16 %v1981_v39, %v1983_v14  ;;  %v918_v52 = vmul.f32 0.70710677, %v892_v53  ;;  %v919_v38 = vmul.f32 0.70710677, %v897_v12  ;;  %v920_v39 = vmul.f32 0.70710677, %v902_v59 }
 0x2ab   :  { %1990 = vpow2.f32 %v606_v42  ;;  %v581_v17 = vsub.f32 %v2369_v16, %v563_v44  ;;  %v2459_v42 = vshrl.u32 %v689_v62, 7 }
 0x2ac   :  { %1992 = vpow2.f32 %v608_v43 }
 0x2ad   :  { %v610_v48 = vmul.f32 1.442695, %v581_v17  ;;  %1894 = vmatpush3.bf16.xpose.msra.mxu0 %v1893_v45  ;;  %v1985_v51 = vpop.eup %1984  ;;  %v691_v61 = vsub.s32 3, %v2459_v42 }
 0x2ae   :  { %v567_v50 = vpop.xlane.xlu1 %566  ;;  %1895 = vmatprep.subr.bf16.mxu0 %v2036_v3 }
 0x2af   :  { %1994 = vpow2.f32 %v610_v48  ;;  %v583_v13 = vsub.f32 %v2374_v18, %v567_v50 }
 0x2b0   :  { %1996 = vpow2.f32 %v612_v49 }
 0x2b1   :  { %v1987_v54 = vpop.eup %1986  ;;  %v614_v56 = vmul.f32 1.442695, %v583_v13 }
 0x2b2   :  { %v1896_v19 = vpack.c.bf16 %v1987_v54, %v1985_v51  ;;  %v1989_v57 = vpop.eup %1988 }
 0x2b3   :  { %1998 = vpow2.f32 %v614_v56 }
 0x2b5   :  { %v1991_v60 = vpop.eup %1990  ;;  %1897 = vmatpush3.bf16.xpose.msra.mxu0 %v1896_v19 }
 0x2b6   :  { %1898 = vmatprep.subr.bf16.mxu0 %v2036_v3  ;;  %v1899_v16 = vpack.c.bf16 %v1991_v60, %v1989_v57  ;;  %v1993_v0 = vpop.eup %1992 }
 0x2b9   :  { %v1995_v1 = vpop.eup %1994 }
 0x2ba   :  { %v1902_v2 = vpack.c.bf16 %v1995_v1, %v1993_v0  ;;  %v1997_v4 = vpop.eup %1996 }
 0x2bd   :  { %v1999_v5 = vpop.eup %1998  ;;  %1900 = vmatpush3.bf16.xpose.msra.mxu0 %v1899_v16 }
 0x2be   :  { %1901 = vmatprep.subr.bf16.mxu0 %v2036_v3  ;;  %v1905_v18 = vpack.c.bf16 %v1999_v5, %v1997_v4 }
 0x2c5   :  { %1903 = vmatpush3.bf16.xpose.msra.mxu0 %v1902_v2 }
 0x2c6   :  { %1904 = vmatprep.subr.bf16.mxu0 %v2036_v3 }
 0x2cd   :  { %1906 = vmatpush3.bf16.xpose.msra.mxu0 %v1905_v18 }
 0x2ce   :  { %1790 = vmatprep.subr.msk.mxu0 %vm387_vm5, %v2401_v6 }
 0x2d4   :  { %1727 = vmatmul.mubr.f32.vlgmr.msra.gmra.mrb[16].mxu0 %v616_v20 }
 0x2d5   :  { %1791 = vmatpush3.msk.msra.mxu0 %vm387_vm5, %v2401_v6  ;;  %1792 = vmatprep.mubr.msk.f32.mxu0 %vm338_vm4, %v905_v24 }
 0x2d6   :  { %1939 = vmatprep.subr.bf16.mxu0 %v2036_v3 }
 0x2d8   :  { %1793 = vmatmul.mubr.msk.f32.vlgmr.msra.gmra.mrb[18].mxu0 %vm338_vm4, %v906_v11 }
 0x2d9   :  { %1795 = vmatprep.mubr.msk.f32.mxu0 %vm338_vm4, %v907_v15 }
 0x2dc   :  { %1796 = vmatmul.mubr.msk.f32.gmra.mrb[20].mxu0 %vm338_vm4, %v908_v22 }
 0x2dd   :  { %1798 = vmatprep.mubr.msk.f32.mxu0 %vm338_vm4, %v909_v8 }
 0x2e0   :  { %1799 = vmatmul.mubr.msk.f32.gmra.mrb[22].mxu0 %vm338_vm4, %v910_v28 }
 0x2e1   :  { %1801 = vmatprep.mubr.msk.f32.mxu0 %vm338_vm4, %v911_v30 }
 0x2e4   :  { %1802 = vmatmul.mubr.msk.f32.gmra.mrb[24].mxu0 %vm338_vm4, %v912_v34 }
 0x2e5   :  { %1804 = vmatprep.mubr.msk.f32.mxu0 %vm338_vm4, %v913_v32 }
 0x2e8   :  { %1805 = vmatmul.mubr.msk.f32.gmra.mrb[26].mxu0 %vm338_vm4, %v914_v40 }
 0x2e9   :  { %1807 = vmatprep.mubr.msk.f32.mxu0 %vm338_vm4, %v915_v33 }
 0x2ec   :  { %1808 = vmatmul.mubr.msk.f32.gmra.mrb[28].mxu0 %vm338_vm4, %v916_v46 }
 0x2ed   :  { %1810 = vmatprep.mubr.msk.f32.mxu0 %vm338_vm4, %v917_v37 }
 0x2f0   :  { %1811 = vmatmul.mubr.msk.f32.gmra.mrb[30].mxu0 %vm338_vm4, %v918_v52 }
 0x2f1   :  { %1813 = vmatprep.mubr.msk.f32.mxu0 %vm338_vm4, %v919_v38 }
 0x2f4   :  { %1814 = vmatmul.mubr.msk.f32.gmra.mrb[32].mxu0 %vm338_vm4, %v920_v39 }
 0x2f5   :  { %1848 = vmatprep.mubr.msk.f32.mxu0 %vm2038_vm3, %v2039_v25 }
 0x3a7   :  { %v684_v58 = vpop.f32.mrb[16].mxu0 }
 0x3a8   :  { %2000 = vrcp.f32 %v684_v58  ;;  %v1728_v14 = vpop.f32.mrb[17].mxu0 }
 0x3ab   :  { %v1794_v43 = vpop.f32.mrb[18].mxu0 }
 0x3ac   :  { %1189 = vmax.xlane.f32.xlu1 %v1794_v43  ;;  %v1108_v55 = vpop.f32.mrb[19].mxu0 }
 0x3ad   :  { %1187 = vmax.xlane.f32.xlu0 %v1108_v55 }
 0x3af   :  { %v1797_v10 = vpop.f32.mrb[20].mxu0 }
 0x3b0   :  { %1193 = vmax.xlane.f32.xlu1 %v1797_v10  ;;  %v1118_v44 = vpop.f32.mrb[21].mxu0 }
 0x3b1   :  { %1191 = vmax.xlane.f32.xlu0 %v1118_v44 }
 0x3b2   :  { %v2001_v45 = vpop.eup %2000 }
 0x3b3   :  { %v692_v25 = vrot.slane %v2001_v45, %v691_v61  ;;  %v1800_v17 = vpop.f32.mrb[22].mxu0 }
 0x3b4   :  { %1197 = vmax.xlane.f32.xlu1 %v1800_v17  ;;  %v1128_v48 = vpop.f32.mrb[23].mxu0 }
 0x3b5   :  { %v693_v49 = vmul.f32 %v692_v25, %v684_v58  ;;  %1195 = vmax.xlane.f32.xlu0 %v1128_v48 }
 0x3b7   :  { %694 = vst [vmem:[%s2509_s5] sm:$0x7] %v693_v49  ;;  %v1803_v50 = vpop.f32.mrb[24].mxu0 }
 0x3b8   :  { %1201 = vmax.xlane.f32.xlu1 %v1803_v50  ;;  %v1138_v13 = vpop.f32.mrb[25].mxu0 }
 0x3b9   :  { %1199 = vmax.xlane.f32.xlu0 %v1138_v13 }
 0x3bb   :  { %v1806_v51 = vpop.f32.mrb[26].mxu0 }
 0x3bc   :  { %1205 = vmax.xlane.f32.xlu1 %v1806_v51  ;;  %v1148_v54 = vpop.f32.mrb[27].mxu0 }
 0x3bd   :  { %1203 = vmax.xlane.f32.xlu0 %v1148_v54 }
 0x3bf   :  { %v2467_v56 = vpop.f32.mrb[28].mxu0 }
 0x3c0   :  { %1209 = vmax.xlane.f32.xlu1 %v2467_v56  ;;  %v2470_v19 = vpop.f32.mrb[29].mxu0 }
 0x3c1   :  { %1207 = vmax.xlane.f32.xlu0 %v2470_v19 }
 0x3c3   :  { %v2473_v57 = vpop.f32.mrb[30].mxu0 }
 0x3c4   :  { %1213 = vmax.xlane.f32.xlu1 %v2473_v57  ;;  %v2476_v60 = vpop.f32.mrb[31].mxu0 }
 0x3c5   :  { %1211 = vmax.xlane.f32.xlu0 %v2476_v60 }
 0x3c7   :  { %v2479_v16 = vpop.f32.mrb[32].mxu0 }
 0x3c8   :  { %1217 = vmax.xlane.f32.xlu1 %v2479_v16  ;;  %v2482_v0 = vpop.f32.mrb[33].mxu0 }
 0x3c9   :  { %1215 = vmax.xlane.f32.xlu0 %v2482_v0 }
 0x439   :  { %v1190_v1 = vpop.xlane.xlu1 %1189 }
 0x43a   :  { %v1220_v2 = vsub.f32 %v1794_v43, %v1190_v1  ;;  %v1188_v4 = vpop.xlane.xlu0 %1187 }
 0x43b   :  { %v1219_v5 = vsub.f32 %v1108_v55, %v1188_v4 }
 0x43c   :  { %v1237_v18 = vmul.f32 1.442695, %v1220_v2 }
 0x43d   :  { %v1235_v7 = vmul.f32 1.442695, %v1219_v5  ;;  %v1194_v20 = vpop.xlane.xlu1 %1193 }
 0x43e   :  { %2002 = vpow2.f32 %v1237_v18  ;;  %v1222_v23 = vsub.f32 %v1797_v10, %v1194_v20  ;;  %v1192_v24 = vpop.xlane.xlu0 %1191 }
 0x43f   :  { %2004 = vpow2.f32 %v1235_v7  ;;  %v1221_v26 = vsub.f32 %v1118_v44, %v1192_v24 }
 0x440   :  { %v1241_v11 = vmul.f32 1.442695, %v1222_v23 }
 0x441   :  { %v1239_v63 = vmul.f32 1.442695, %v1221_v26  ;;  %v1198_v15 = vpop.xlane.xlu1 %1197 }
 0x442   :  { %2006 = vpow2.f32 %v1241_v11  ;;  %v1224_v21 = vsub.f32 %v1800_v17, %v1198_v15  ;;  %v1196_v22 = vpop.xlane.xlu0 %1195  ;;  %v1267_v15 = vrot.slane %v2401_v6, 2 }
 0x443   :  { %2008 = vpow2.f32 %v1239_v63  ;;  %v1223_v29 = vsub.f32 %v1128_v48, %v1196_v22 }
 0x444   :  { %v1245_v8 = vmul.f32 1.442695, %v1224_v21 }
 0x445   :  { %v1243_v27 = vmul.f32 1.442695, %v1223_v29  ;;  %v1202_v28 = vpop.xlane.xlu1 %1201 }
 0x446   :  { %2010 = vpow2.f32 %v1245_v8  ;;  %v1226_v35 = vsub.f32 %v1803_v50, %v1202_v28  ;;  %v1200_v30 = vpop.xlane.xlu0 %1199 }
 0x447   :  { %2012 = vpow2.f32 %v1243_v27  ;;  %v1225_v31 = vsub.f32 %v1138_v13, %v1200_v30 }
 0x448   :  { %v2003_v34 = vpop.eup %2002  ;;  %v1249_v41 = vmul.f32 1.442695, %v1226_v35 }
 0x449   :  { %v2005_v32 = vpop.eup %2004  ;;  %v1247_v9 = vmul.f32 1.442695, %v1225_v31  ;;  %v1206_v40 = vpop.xlane.xlu1 %1205 }
 0x44a   :  { %2014 = vpow2.f32 %v1249_v41  ;;  %v1228_v47 = vsub.f32 %v1806_v51, %v1206_v40  ;;  %v1204_v33 = vpop.xlane.xlu0 %1203  ;;  %v1940_v36 = vpack.c.bf16 %v2003_v34, %v2005_v32 }
 0x44b   :  { %2016 = vpow2.f32 %v1247_v9  ;;  %v1227_v46 = vsub.f32 %v1148_v54, %v1204_v33 }
 0x44c   :  { %v2007_v53 = vpop.eup %2006  ;;  %v1253_v37 = vmul.f32 1.442695, %v1228_v47  ;;  %1941 = vmatpush3.bf16.xpose.msra.mxu0 %v1940_v36 }
 0x44d   :  { %v2009_v12 = vpop.eup %2008  ;;  %v1251_v52 = vmul.f32 1.442695, %v1227_v46  ;;  %v1210_v59 = vpop.xlane.xlu1 %1209  ;;  %1942 = vmatprep.subr.bf16.mxu0 %v2036_v3 }
 0x44e   :  { %2018 = vpow2.f32 %v1253_v37  ;;  %v1230_v38 = vsub.f32 %v2467_v56, %v1210_v59  ;;  %v1208_v39 = vpop.xlane.xlu0 %1207  ;;  %v1943_v58 = vpack.c.bf16 %v2007_v53, %v2009_v12 }
 0x44f   :  { %2020 = vpow2.f32 %v1251_v52  ;;  %v1229_v62 = vsub.f32 %v2470_v19, %v1208_v39 }
 0x450   :  { %v2011_v14 = vpop.eup %2010  ;;  %v1257_v43 = vmul.f32 1.442695, %v1230_v38 }
 0x451   :  { %v2013_v55 = vpop.eup %2012  ;;  %v1255_v10 = vmul.f32 1.442695, %v1229_v62  ;;  %v1214_v44 = vpop.xlane.xlu1 %1213 }
 0x452   :  { %2022 = vpow2.f32 %v1257_v43  ;;  %v1232_v45 = vsub.f32 %v2473_v57, %v1214_v44  ;;  %v1212_v25 = vpop.xlane.xlu0 %1211  ;;  %v1946_v17 = vpack.c.bf16 %v2011_v14, %v2013_v55 }
 0x453   :  { %2024 = vpow2.f32 %v1255_v10  ;;  %v1231_v48 = vsub.f32 %v2476_v60, %v1212_v25 }
 0x454   :  { %v2015_v49 = vpop.eup %2014  ;;  %v1261_v50 = vmul.f32 1.442695, %v1232_v45  ;;  %1944 = vmatpush3.bf16.xpose.msra.mxu0 %v1943_v58 }
 0x455   :  { %v2017_v13 = vpop.eup %2016  ;;  %v1259_v51 = vmul.f32 1.442695, %v1231_v48  ;;  %v1218_v54 = vpop.xlane.xlu1 %1217  ;;  %1945 = vmatprep.subr.bf16.mxu0 %v2036_v3 }
 0x456   :  { %2026 = vpow2.f32 %v1261_v50  ;;  %v1234_v56 = vsub.f32 %v2479_v16, %v1218_v54  ;;  %v1216_v19 = vpop.xlane.xlu0 %1215  ;;  %v1949_v1 = vpack.c.bf16 %v2015_v49, %v2017_v13 }
 0x457   :  { %2028 = vpow2.f32 %v1259_v51  ;;  %v1233_v57 = vsub.f32 %v2482_v0, %v1216_v19 }
 0x458   :  { %v2019_v2 = vpop.eup %2018  ;;  %v1265_v4 = vmul.f32 1.442695, %v1234_v56 }
 0x459   :  { %v2021_v5 = vpop.eup %2020  ;;  %v1263_v60 = vmul.f32 1.442695, %v1233_v57 }
 0x45a   :  { %2030 = vpow2.f32 %v1265_v4  ;;  %v1952_v18 = vpack.c.bf16 %v2019_v2, %v2021_v5 }
 0x45b   :  { %2032 = vpow2.f32 %v1263_v60 }
 0x45c   :  { %v2023_v7 = vpop.eup %2022  ;;  %1947 = vmatpush3.bf16.xpose.msra.mxu0 %v1946_v17 }
 0x45d   :  { %v2025_v20 = vpop.eup %2024  ;;  %1948 = vmatprep.subr.bf16.mxu0 %v2036_v3 }
 0x45e   :  { %v1955_v23 = vpack.c.bf16 %v2023_v7, %v2025_v20 }
 0x460   :  { %v2027_v24 = vpop.eup %2026 }
 0x461   :  { %v2029_v16 = vpop.eup %2028 }
 0x462   :  { %v1958_v26 = vpack.c.bf16 %v2027_v24, %v2029_v16 }
 0x464   :  { %v2031_v11 = vpop.eup %2030  ;;  %1950 = vmatpush3.bf16.xpose.msra.mxu0 %v1949_v1 }
 0x465   :  { %v2033_v63 = vpop.eup %2032  ;;  %1951 = vmatprep.subr.bf16.mxu0 %v2036_v3 }
 0x466   :  { %v1961_v0 = vpack.c.bf16 %v2031_v11, %v2033_v63 }
 0x46c   :  { %1953 = vmatpush3.bf16.xpose.msra.mxu0 %v1952_v18 }
 0x46d   :  { %1954 = vmatprep.subr.bf16.mxu0 %v2036_v3 }
 0x474   :  { %1956 = vmatpush3.bf16.xpose.msra.mxu0 %v1955_v23 }
 0x475   :  { %1957 = vmatprep.subr.bf16.mxu0 %v2036_v3 }
 0x47c   :  { %1959 = vmatpush3.bf16.xpose.msra.mxu0 %v1958_v26 }
 0x47d   :  { %1960 = vmatprep.subr.bf16.mxu0 %v2036_v3 }
 0x484   :  { %1962 = vmatpush3.bf16.xpose.msra.mxu0 %v1961_v0 }
 0x48b   :  { %1849 = vmatmul.mubr.f32.vlgmr.msra.gmra.mrb[34].mxu0 %v1267_v15 }
 0x55e   :  { %v1335_v21 = vpop.f32.mrb[34].mxu0 }
 0x55f   :  { %2034 = vrcp.f32 %v1335_v21  ;;  %v1850_v22 = vpop.f32.mrb[35].mxu0 }
 0x569   :  { %v2035_v29 = vpop.eup %2034 }
 0x56a   :  { %v1343_v8 = vrot.slane %v2035_v29, %v691_v61 }
 0x56c   :  { %v1344_v27 = vmul.f32 %v1343_v8, %v1335_v21 }
 0x56e   :  { %1470 = vst [vmem:[%s2509_s5 + $0x4] sm:$0x7] %v1344_v27 }

</bundles_post_ra>
